<compile_context>
chip_gen: v5e
topology: v5e:2x2
jax: 0.10.0
libtpu: 0.0.40
codegen_flags: <defaults>
</compile_context>

<pallas_src>
import jax
import jax.numpy as jnp
from jax.experimental import pallas as pl
from jax.experimental.pallas import tpu as pltpu


_LANE = 128                              # vreg lane width (last dim)
_SUBLANE = 8                             # vreg sublanes (second-to-last dim)
_PER_BUFFER_BUDGET = 4 * 1024 * 1024     # ~4 MiB per pipeline buffer
_HW_TILE_CAP = 2048                      # lane-dense output, amortizes step overhead


def _round_up(x: int, m: int) -> int:
    return ((x + m - 1) // m) * m


def _tile_bytes(rows: int, cols: int, itemsize: int) -> int:
    """VMEM footprint of one (rows, cols) tile incl. (sublane, lane) padding."""
    return _round_up(max(rows, 1), _SUBLANE) * _round_up(max(cols, 1), _LANE) * itemsize


def _patch_unembed_kernel(x_ref, o_ref):
    # x_ref: (T_HW, C) VMEM tile (batch dim squeezed away)
    # o_ref: (C, T_HW) VMEM tile
    # Pure XLU transpose -> hides entirely under the DMA pipeline.
    # TODO(synk): for bf16/int8 on v6e/v7x, if a bundle dump shows the packed
    # XLU transpose as the exposed slot, switch to an MXU identity-matmul
    # transpose (exact, uses the otherwise-idle MXU slot).
    o_ref[...] = jnp.swapaxes(x_ref[...], 0, 1)


def _pick_hw_tile(HW: int, C: int, itemsize: int, budget: int) -> int:
    """HW tile with C kept whole (contiguous input DMA).

    Returns HW (full slab) for small problems; otherwise the largest multiple
    of 128 <= _HW_TILE_CAP whose lane-padded input tile fits the budget.
    """
    if _tile_bytes(HW, C, itemsize) <= budget:
        return HW
    best = _LANE
    t = _LANE
    while t <= _HW_TILE_CAP:
        if _tile_bytes(t, C, itemsize) <= budget:
            best = t
        else:
            break
        t += _LANE
    return best


def patch_unembed(x: jax.Array, x_size,
                  *, per_buffer_budget_bytes: int = _PER_BUFFER_BUDGET) -> jax.Array:
    """Pallas equivalent of PatchUnEmbed.forward.

    Args:
      x: (B, HW, C) array.
      x_size: (H, W) with H * W == HW.
      per_buffer_budget_bytes: VMEM budget per pipeline buffer (testing knob).

    Returns:
      (B, C, H, W) array, same dtype as x.
    """
    B, HW, C = x.shape
    H, W = int(x_size[0]), int(x_size[1])
    assert H * W == HW, "x_size must satisfy H * W == HW"

    itemsize = jnp.dtype(x.dtype).itemsize
    t_hw = _pick_hw_tile(HW, C, itemsize, per_buffer_budget_bytes)

    if t_hw >= HW:
        # Small problem: one full (HW, C) slab per batch element, grid = (B,).
        t_hw = HW
        grid = (B,)
        in_spec = pl.BlockSpec((pl.Squeezed(), HW, C), lambda b: (b, 0, 0))
        out_spec = pl.BlockSpec((pl.Squeezed(), C, HW), lambda b: (b, 0, 0))
    else:
        # Tiled path: masked edge block when HW % t_hw != 0 (no full-extent
        # fallback, no wrapper-side pad/copy).
        n_hw = pl.cdiv(HW, t_hw)
        if B == 1:
            # Drop the degenerate batch axis so the HW axis leads and shards
            # across both TensorCores on v7x.
            grid = (n_hw,)
            in_spec = pl.BlockSpec((pl.Squeezed(), t_hw, C), lambda i: (0, i, 0))
            out_spec = pl.BlockSpec((pl.Squeezed(), C, t_hw), lambda i: (0, 0, i))
        else:
            grid = (B, n_hw)
            in_spec = pl.BlockSpec((pl.Squeezed(), t_hw, C), lambda b, i: (b, i, 0))
            out_spec = pl.BlockSpec((pl.Squeezed(), C, t_hw), lambda b, i: (b, 0, i))

    dims = ("parallel",) * len(grid)

    # Explicit scoped-VMEM limit from the real padded footprint of the default
    # double-buffered pipeline (2x margin, floor 16 MiB = v5e default, cap
    # 48 MiB = safe within v7x's 64 MiB/TC physical VMEM).
    in_buf = _tile_bytes(t_hw, C, itemsize)
    out_buf = _tile_bytes(C, t_hw, itemsize)
    vmem_need = 2 * (in_buf + out_buf)
    vmem_limit = int(min(48 << 20, max(16 << 20, 2 * vmem_need)))

    bytes_accessed = 2 * B * HW * C * itemsize  # one read + one write of x

    transposed = pl.pallas_call(
        _patch_unembed_kernel,
        out_shape=jax.ShapeDtypeStruct((B, C, HW), x.dtype),
        grid_spec=pltpu.PrefetchScalarGridSpec(
            num_scalar_prefetch=0,
            grid=grid,
            in_specs=[in_spec],
            out_specs=out_spec,
        ),
        compiler_params=pltpu.CompilerParams(
            dimension_semantics=dims,
            vmem_limit_bytes=vmem_limit,
        ),
        cost_estimate=pl.CostEstimate(
            flops=0, transcendentals=0, bytes_accessed=bytes_accessed),
    )(x)

    # Pure metadata reshape (the .view in PyTorch): (B, C, HW) -> (B, C, H, W)
    return transposed.reshape(B, C, H, W)


if __name__ == "__main__":
    def ref(x, H, W):
        B, HW, C = x.shape
        return jnp.transpose(x, (0, 2, 1)).reshape(B, C, H, W)

    # 1) Module-consistent small shape: 16x16 patch grid, embed_dim 32, B=2.
    B, H, W, C = 2, 16, 16, 32
    x1 = jax.random.normal(jax.random.PRNGKey(0), (B, H * W, C), dtype=jnp.float32)
    o1 = jax.block_until_ready(patch_unembed(x1, (H, W)))
    assert o1.shape == (B, C, H, W) and o1.dtype == x1.dtype
    assert bool(jnp.array_equal(o1, ref(x1, H, W)))

    # 2) Non-multiple-of-128 spatial extent (full-extent slab path).
    B, H, W, C = 2, 15, 15, 32
    x2 = jax.random.normal(jax.random.PRNGKey(1), (B, H * W, C), dtype=jnp.float32)
    o2 = jax.block_until_ready(patch_unembed(x2, (H, W)))
    assert o2.shape == (B, C, H, W)
    assert bool(jnp.array_equal(o2, ref(x2, H, W)))

    # 3) Tiled path with a masked edge block (tiny budget forces tiling at a
    #    small test size; production calls keep the default ~4 MiB budget).
    B, H, W, C = 1, 45, 45, 64
    x3 = jax.random.normal(jax.random.PRNGKey(2), (B, H * W, C), dtype=jnp.float32)
    o3 = jax.block_until_ready(
        patch_unembed(x3, (H, W), per_buffer_budget_bytes=64 * 1024))
    assert o3.shape == (B, C, H, W)
    assert bool(jnp.array_equal(o3, ref(x3, H, W)))

    print("KERNEL_OK")
</pallas_src>

<mosaic_0001>
module attributes {stable_mosaic.version = 11 : i64} {
  func.func @_patch_unembed_kernel(%arg0: i32, %arg1: memref<1x256x32xf32, #tpu.memory_space<vmem>>, %arg2: memref<1x32x256xf32, #tpu.memory_space<vmem>>) attributes {dimension_semantics = [#tpu.dimension_semantics<parallel>], iteration_bounds = array<i64: 2>, scalar_prefetch = 0 : i64, scratch_operands = 0 : i64, tpu.core_type = #tpu.core_type<tc>, window_params = [{transform_indices = @transform_0, window_bounds = array<i64: 1, 256, 32>}, {transform_indices = @transform_1, window_bounds = array<i64: 1, 32, 256>}]} {
    %c0 = arith.constant 0 : index
    %c0_0 = arith.constant 0 : index
    %c0_1 = arith.constant 0 : index
    %0 = vector.load %arg1[%c0, %c0_0, %c0_1] : memref<1x256x32xf32, #tpu.memory_space<vmem>>, vector<1x256x32xf32>
    %1 = vector.shape_cast %0 : vector<1x256x32xf32> to vector<256x32xf32>
    %2 = tpu.transpose %1, [1, 0] : vector<256x32xf32> -> vector<32x256xf32>
    %c0_2 = arith.constant 0 : index
    %c0_3 = arith.constant 0 : index
    %c0_4 = arith.constant 0 : index
    %3 = vector.load %arg2[%c0_2, %c0_3, %c0_4] : memref<1x32x256xf32, #tpu.memory_space<vmem>>, vector<1x32x256xf32>
    %4 = vector.shape_cast %3 : vector<1x32x256xf32> to vector<32x256xf32>
    %5 = vector.shape_cast %2 : vector<32x256xf32> to vector<1x32x256xf32>
    tpu.vector_store %arg2[%c0_2, %c0_3, %c0_4], %5 {strides = array<i32>} : memref<1x32x256xf32, #tpu.memory_space<vmem>>, vector<1x32x256xf32>,
    return
  }
  func.func @transform_0(%arg0: i32) -> (i32, i32, i32) {
    %c0_i32 = arith.constant 0 : i32
    %c0_i32_0 = arith.constant 0 : i32
    %c0_i32_1 = arith.constant 0 : i32
    return %arg0, %c0_i32, %c0_i32_0 : i32, i32, i32
  }
  func.func @transform_1(%arg0: i32) -> (i32, i32, i32) {
    %c0_i32 = arith.constant 0 : i32
    %c0_i32_0 = arith.constant 0 : i32
    %c0_i32_1 = arith.constant 0 : i32
    return %arg0, %c0_i32, %c0_i32_0 : i32, i32, i32
  }
}

</mosaic_0001>

<bundles_post_ra>
// kernel: tpu_custom_call.1
= control target key start
LH: loop header
LB: loop body
LE: loop exit
PB: predicated region body
PF: predicated region fallthrough
CT: control target
= control target key end

     0   :  { %6 = vsyncpa [#allocation3], 0  ;;  %s547_s0 = inlined_call_operand.vmem [shape: f32[2,256,32], index: 0, kind: input, shape index: {}]   ;;  %s548_s1 = inlined_call_operand.hbm [shape: f32[2,32,256], index: 1, kind: output, shape index: {}]  }
   0x1   :  { %8 = vsyncpa [#allocation3 + $0x1], 0  ;;  %s428_s6 = smov 0   ;;  %s430_s7 = smov 0  }
   0x2   :  { %s432_s8 = smov 0   ;;  %s434_s9 = smov 0  }
   0x3 LB: > { %s449_s10 = sadd.s32 4294967295, %s414_s9   ;;  %s297_s11 = sadd.s32 4294967294, %s414_s9   ;;  %s414_s9 = sphi %s434_s9, %s554_s9   ;;  %s410_s8 = sphi %s432_s8, %s553_s8   ;;  %s406_s7 = sphi %s430_s7, %s552_s7   ;;  %s402_s6 = sphi %s428_s6, %s551_s6  }
   0x4   : > { %s453_s12 = sadd.s32 1, %s414_s9   ;;  %s47_s13 = sadd.s32 1, %s410_s8 }
   0x5   : > { %s44_s14 = ssub.s32 %s414_s9, %s453_s12  ;;  %p57_p0 = scmp.ne.s32.totalorder %s410_s8, %s406_s7 }
   0x6   : > { %p45_p1 = scmp.eq.s32.totalorder %s44_s14, 0  ;;  %p58_p2 = scmp.eq.s32.totalorder %s449_s10, 1 }
   0x7   : > { %p63_p3 = scmp.ne.s32.totalorder %s406_s7, %s402_s6  ;;  %p64_p4 = scmp.eq.s32.totalorder %s297_s11, 1 }
   0x8   : > { %s464_s15 = scalar_select %p45_p1, %s410_s8, %s47_s13  }
   0x9   : > { %p466_p5 = por %p58_p2, %p57_p0  ;;  %p470_p6 = por %p64_p4, %p63_p3 }
   0xa   : > { %p300_p7 = scmp.ge.s32.totalorder %s414_s9, 1  ;;  %p90_p8 = scmp.lt.s32.totalorder %s414_s9, 3 }
   0xc   : > { %p91_p9 = pnand %p300_p7, %p90_p8 }
   0xd   : > { %p110_p10 = scmp.lt.s32.totalorder (!%p91_p9), %s449_s10, 1  ;;  %s107_s23 = sand.u32 (!%p91_p9), 1, %s406_s7  }
   0xe   : > { %94 = sbr.rel (%p91_p9) target bundleno = 218 (0xda), region = 24  ;;  %s301_s24 = sshll.u32 (!%p91_p9), %s107_s23, 6 }
   0xf   : > { %s109_s25 = scalar_lea.vmem (!%p91_p9), [#allocation2], %s301_s24  ;;  %s310_s26 = sshll.u32 (!%p91_p9), %s449_s10, 6 }
  0x10   : > { %s231_s29 = scalar_lea.hbm (!%p91_p9), %s548_s1, %s310_s26  ;;  %s232_s30 = sshll.u32 (!%p91_p9), %s109_s25, 4  ;;  %s233_s30 = int_to_ptr.vmem [resolvable:$true] %s232_s30 }
  0x11   : > { %s234_s2 = sshll.u32 (!%p91_p9), %s231_s29, 4  ;;  %s220_s3 = scalar_lea.sflag (!%p91_p9), [#allocation3], %s107_s23  ;;  %s235_s2 = int_to_ptr.hbm [resolvable:$true] %s234_s2 }
  0x12   : > { %s366_s4 = sshra.s32 (!%p91_p9), %s235_s2, 4  ;;  %s372_s13 = scalar_lea.hbm (!%p91_p9), %s548_s1, 128  ;;  %s367_s4 = int_to_ptr.hbm [resolvable:$true] %s366_s4 }
  0x13   : > { %s111_s18 = scalar_select %p110_p10, %s449_s10, 1 }
  0x14   : > { %s368_s5 = scalar_lea.hbm %s367_s4, 64  ;;  %p373_p0 = scmp.lt.s32.totalorder %s367_s4, %s548_s1 }
  0x15   : > { %s309_s19 = sshll.u32 %s111_s18, 8  ;;  %p369_p11 = scmp.ne.s32.totalorder %s367_s4, %s368_s5 }
  0x16   : > { %s481_s22 = scalar_lea.vmem %s547_s0, %s309_s19  ;;  %p374_p1 = scmp.lt.s32.totalorder %s372_s13, %s368_s5 }
  0x17   : > { %v131_v0 = vld [vmem:[%s481_s22 + $0x80] sm:$0xff]  ;;  %v132_v2 = vld [vmem:[%s481_s22 + $0x88] sm:$0xff]  ;;  %v133_v4 = vld [vmem:[%s481_s22 + $0x90] sm:$0xff]  ;;  %p370_p12 = pnand %p369_p11, %p466_p5 }
  0x18   : > { %v115_v1 = vld [vmem:[%s481_s22] sm:$0xff]  ;;  %179 = vxpose.xlu1.b32.start [1/16] (narrow) %v131_v0, 32  ;;  %v116_v3 = vld [vmem:[%s481_s22 + $0x8] sm:$0xff]  ;;  %v117_v5 = vld [vmem:[%s481_s22 + $0x10] sm:$0xff]  ;;  %p375_p2 = por %p374_p1, %p373_p0 }
  0x19   : > { %147 = vxpose.xlu0.b32.start [1/16] (narrow) %v115_v1, 32  ;;  %v134_v6 = vld [vmem:[%s481_s22 + $0x98] sm:$0xff]  ;;  %v135_v8 = vld [vmem:[%s481_s22 + $0xa0] sm:$0xff]  ;;  %v136_v10 = vld [vmem:[%s481_s22 + $0xa8] sm:$0xff]  ;;  %p371_p13 = pneg %p370_p12 }
  0x1a   : > { %v118_v7 = vld [vmem:[%s481_s22 + $0x18] sm:$0xff]  ;;  %v119_v9 = vld [vmem:[%s481_s22 + $0x20] sm:$0xff]  ;;  %v120_v11 = vld [vmem:[%s481_s22 + $0x28] sm:$0xff] }
  0x1b   : > { %v137_v12 = vld [vmem:[%s481_s22 + $0xb0] sm:$0xff]  ;;  %v138_v14 = vld [vmem:[%s481_s22 + $0xb8] sm:$0xff]  ;;  %v139_v16 = vld [vmem:[%s481_s22 + $0xc0] sm:$0xff]  ;;  %p376_p3 = pnand %p375_p2, %p371_p13 }
  0x1c   : > { %v121_v13 = vld [vmem:[%s481_s22 + $0x30] sm:$0xff]  ;;  %v122_v15 = vld [vmem:[%s481_s22 + $0x38] sm:$0xff]  ;;  %v123_v17 = vld [vmem:[%s481_s22 + $0x40] sm:$0xff] }
  0x1d   : > { %v140_v18 = vld [vmem:[%s481_s22 + $0xc8] sm:$0xff]  ;;  %v141_v20 = vld [vmem:[%s481_s22 + $0xd0] sm:$0xff]  ;;  %v142_v22 = vld [vmem:[%s481_s22 + $0xd8] sm:$0xff] }
  0x1e   : > { %v124_v19 = vld [vmem:[%s481_s22 + $0x48] sm:$0xff]  ;;  %v125_v21 = vld [vmem:[%s481_s22 + $0x50] sm:$0xff]  ;;  %v126_v23 = vld [vmem:[%s481_s22 + $0x58] sm:$0xff] }
  0x1f   : > { %v143_v24 = vld [vmem:[%s481_s22 + $0xe0] sm:$0xff]  ;;  %v144_v26 = vld [vmem:[%s481_s22 + $0xe8] sm:$0xff]  ;;  %v145_v28 = vld [vmem:[%s481_s22 + $0xf0] sm:$0xff] }
  0x20   : > { %180 = vxpose.xlu1.b32.cont [2/16] (narrow) %v132_v2, 32  ;;  %v127_v25 = vld [vmem:[%s481_s22 + $0x60] sm:$0xff]  ;;  %v128_v27 = vld [vmem:[%s481_s22 + $0x68] sm:$0xff]  ;;  %v129_v29 = vld [vmem:[%s481_s22 + $0x70] sm:$0xff] }
  0x21   : > { %148 = vxpose.xlu0.b32.cont [2/16] (narrow) %v116_v3, 32  ;;  %v146_v30 = vld [vmem:[%s481_s22 + $0xf8] sm:$0xff] }
  0x22   : > { %v130_v31 = vld [vmem:[%s481_s22 + $0x78] sm:$0xff] }
  0x28   : > { %181 = vxpose.xlu1.b32.cont [3/16] (narrow) %v133_v4, 32 }
  0x29   : > { %149 = vxpose.xlu0.b32.cont [3/16] (narrow) %v117_v5, 32 }
  0x30   : > { %182 = vxpose.xlu1.b32.cont [4/16] (narrow) %v134_v6, 32 }
  0x31   : > { %150 = vxpose.xlu0.b32.cont [4/16] (narrow) %v118_v7, 32 }
  0x38   : > { %183 = vxpose.xlu1.b32.cont [5/16] (narrow) %v135_v8, 32 }
  0x39   : > { %151 = vxpose.xlu0.b32.cont [5/16] (narrow) %v119_v9, 32 }
  0x40   : > { %184 = vxpose.xlu1.b32.cont [6/16] (narrow) %v136_v10, 32 }
  0x41   : > { %152 = vxpose.xlu0.b32.cont [6/16] (narrow) %v120_v11, 32 }
  0x48   : > { %185 = vxpose.xlu1.b32.cont [7/16] (narrow) %v137_v12, 32 }
  0x49   : > { %153 = vxpose.xlu0.b32.cont [7/16] (narrow) %v121_v13, 32 }
  0x50   : > { %186 = vxpose.xlu1.b32.cont [8/16] (narrow) %v138_v14, 32 }
  0x51   : > { %154 = vxpose.xlu0.b32.cont [8/16] (narrow) %v122_v15, 32 }
  0x58   : > { %187 = vxpose.xlu1.b32.cont [9/16] (narrow) %v139_v16, 32 }
  0x59   : > { %155 = vxpose.xlu0.b32.cont [9/16] (narrow) %v123_v17, 32 }
  0x60   : > { %188 = vxpose.xlu1.b32.cont [10/16] (narrow) %v140_v18, 32 }
  0x61   : > { %156 = vxpose.xlu0.b32.cont [10/16] (narrow) %v124_v19, 32 }
  0x68   : > { %189 = vxpose.xlu1.b32.cont [11/16] (narrow) %v141_v20, 32 }
  0x69   : > { %157 = vxpose.xlu0.b32.cont [11/16] (narrow) %v125_v21, 32 }
  0x70   : > { %190 = vxpose.xlu1.b32.cont [12/16] (narrow) %v142_v22, 32 }
  0x71   : > { %158 = vxpose.xlu0.b32.cont [12/16] (narrow) %v126_v23, 32 }
  0x78   : > { %191 = vxpose.xlu1.b32.cont [13/16] (narrow) %v143_v24, 32 }
  0x79   : > { %159 = vxpose.xlu0.b32.cont [13/16] (narrow) %v127_v25, 32 }
  0x80   : > { %192 = vxpose.xlu1.b32.cont [14/16] (narrow) %v144_v26, 32 }
  0x81   : > { %160 = vxpose.xlu0.b32.cont [14/16] (narrow) %v128_v27, 32 }
  0x88   : > { %193 = vxpose.xlu1.b32.cont [15/16] (narrow) %v145_v28, 32 }
  0x89   : > { %161 = vxpose.xlu0.b32.cont [15/16] (narrow) %v129_v29, 32 }
  0x90   : > { %194 = vxpose.xlu1.b32.end [16/16] (narrow) %v146_v30, 32 }
  0x91   : > { %162 = vxpose.xlu0.b32.end [16/16] (narrow) %v130_v31, 32 }
  0xbc   : > { %v195_v32 = vpop.trf.xlu1 }
  0xbd   : > { %v163_v33 = vpop.trf.xlu0  ;;  %212 = vst [vmem:[%s109_s25 + $0x8] sm:$0xff] %v195_v32 }
  0xbe   : > { %211 = vst [vmem:[%s109_s25] sm:$0xff] %v163_v33 }
  0xc4   : > { %v196_v34 = vpop.trf.xlu1 }
  0xc5   : > { %v164_v35 = vpop.trf.xlu0  ;;  %214 = vst [vmem:[%s109_s25 + $0x18] sm:$0xff] %v196_v34 }
  0xc6   : > { %213 = vst [vmem:[%s109_s25 + $0x10] sm:$0xff] %v164_v35 }
  0xcc   : > { %v197_v36 = vpop.trf.xlu1 }
  0xcd   : > { %v165_v37 = vpop.trf.xlu0  ;;  %216 = vst [vmem:[%s109_s25 + $0x28] sm:$0xff] %v197_v36 }
  0xce   : > { %215 = vst [vmem:[%s109_s25 + $0x20] sm:$0xff] %v165_v37 }
  0xd4   : > { %v198_v38 = vpop.trf.xlu1 }
  0xd5   : > { %v166_v39 = vpop.trf.xlu0  ;;  %218 = vst [vmem:[%s109_s25 + $0x38] sm:$0xff] %v198_v38 }
  0xd6   : > { %217 = vst [vmem:[%s109_s25 + $0x30] sm:$0xff] %v166_v39 }
  0xd7   : > { %379 = shalt.err (!%p376_p3)
}
  0xd8   : > { %s416_s19 = smov 256   ;;  %s417_s20 = smov 16  }
  0xd9   : > { %311 = dma.vmem_to_hbm [thread:$0]  (%p466_p5), %s233_s30, 1024, %s235_s2, %s220_s3, %s416_s19, %s416_s19, %s417_s20  }
  0xda PF: > { %p317_p4 = scmp.ge.s32.totalorder %s414_s9, 2  ;;  %s249_s21 = sand.u32 1, %s402_s6  }
  0xdb   : > { %s250_s22 = scalar_lea.sflag [#allocation3], %s249_s21 }
  0xdc   : > { %p314_p7 = pnand %p317_p4, %p470_p6 }
  0xde   : > { %p315_p8 = pneg %p314_p7 }
  0xe0   : > { %397 = dma.done.wait (%p315_p8), %s250_s22, 1024  }
  0xe1   : > { %399 = vsyncadd (%p315_p8), %s250_s22, 4294966272  ;;  %p11_p9 = scmp.ge.s32.totalorder %s453_s12, 4   ;;  %s551_s6 = smov %s406_s7 }
  0xe2   : > { %s552_s7 = smov %s410_s8  ;;  %s553_s8 = smov %s464_s15 }
  0xe3   : > { %s554_s9 = smov %s453_s12  ;;  %13 = sbr.rel (!%p11_p9) target bundleno = 3 (0x3), region = 59 }
  0xe8   :  { %256 = vsyncpa [#allocation3], 1 }
  0xe9   :  { %258 = vsyncpa [#allocation3 + $0x1], 1 }

</bundles_post_ra>
